<compile_context>
chip_gen: v7x
topology: tpu7x:2x2x1
jax: 0.10.0
libtpu: 0.0.40
codegen_flags: <defaults>
</compile_context>

<pallas_src>
from functools import partial

import jax
import jax.numpy as jnp
from jax import lax
from jax.experimental import pallas as pl
from jax.experimental.pallas import tpu as pltpu

_HIDDEN = 20
_HIDDEN_PAD = 24        # hidden padded to a sublane multiple; row 20 carries the b2 fold


def _round_up(n, m):
    return ((n + m - 1) // m) * m


def _make_kernel(ch: int, n_chunks: int):
    """Kernel over one batch tile: x_ref [4, TB], o_ref [1, TB], params [6, 24, ch]."""

    def kernel(p_ref, x_ref, o_ref):
        # Pre-broadcast (lane-wide) parameters, resident across the whole grid.
        w1c0 = p_ref[0]          # [24, ch]  column k=0 of W1 over (padded) hidden
        w1c1 = p_ref[1]
        w1c2 = p_ref[2]
        w1c3 = p_ref[3]
        b1 = p_ref[4]            # [24, ch]  b1 (+ b2-fold selector at row 20)
        w2 = p_ref[5]            # [24, ch]  w2 (+ b2 at row 20)

        def compute_chunk(off):
            x = x_ref[:, pl.ds(off, ch)].astype(jnp.float32)      # [4, ch]
            # Layer 1: 4 broadcast FMAs on the VPU (sublane-broadcast of x rows is XLU).
            acc = b1 + w1c0 * x[0:1, :]
            acc = acc + w1c1 * x[1:2, :]
            acc = acc + w1c2 * x[2:3, :]
            acc = acc + w1c3 * x[3:4, :]
            h = jnp.maximum(acc, 0.0)                             # [24, ch]
            # Layer 2: multiply + cross-sublane reduce; b2 is folded via row 20.
            o_ref[:, pl.ds(off, ch)] = jnp.sum(w2 * h, axis=0, keepdims=True)

        if n_chunks == 1:
            compute_chunk(0)
        else:
            def body(c, carry):
                compute_chunk(pl.multiple_of(c * ch, ch))
                return carry

            lax.fori_loop(0, n_chunks, body, 0)

    return kernel


def _pack_params(w1, b1, w2, b2, ch):
    """Pack/pre-broadcast params into one [6, 24, ch] f32 slab (lane-wide rows).

    w1: [4, 20] (stored [in, out]), b1: [20], w2: [20, 1], b2: [1]
    Row layout over axis 0: 0..3 = W1 columns, 4 = b1, 5 = w2.
    b2 fold: padded hidden unit 20 gets (w1=0, b1=1, w2=b2) -> relu(1)*b2 = b2.
    """
    cols = jnp.zeros((6, _HIDDEN_PAD), jnp.float32)
    cols = cols.at[0:4, 0:_HIDDEN].set(jnp.asarray(w1, jnp.float32))       # [4, 20]
    cols = cols.at[4, 0:_HIDDEN].set(jnp.asarray(b1, jnp.float32))
    cols = cols.at[5, 0:_HIDDEN].set(jnp.asarray(w2, jnp.float32)[:, 0])
    cols = cols.at[4, _HIDDEN].set(1.0)
    cols = cols.at[5, _HIDDEN].set(jnp.asarray(b2, jnp.float32)[0])
    return jnp.broadcast_to(cols[:, :, None], (6, _HIDDEN_PAD, ch))


@partial(jax.jit, static_argnames=("max_tile", "chunk", "small_batch", "force_pallas"))
def cnn_value_forward(x, w1, b1, w2, b2, *, max_tile=65536, chunk=512,
                      small_batch=1024, force_pallas=False):
    """Forward pass of CnnValue.

    x : [B, ...] with prod(...) == 4 (torch.nn.Flatten semantics)
    w1: [4, 20], b1: [20], w2: [20, 1], b2: [1]
    returns: [B, 1] float32
    """
    B = x.shape[0]
    x_flat = jnp.reshape(x, (B, -1))                        # Flatten (glue)
    assert x_flat.shape[1] == 4, "CnnValue expects 4 flattened features"
    if x_flat.dtype != jnp.bfloat16:                        # bf16 passes through, upcast in-kernel
        x_flat = x_flat.astype(jnp.float32)

    # Small-batch fast path: XLA fuses this tiny MLP for free; no pallas launch.
    if (B <= small_batch) and not force_pallas:
        xf = x_flat.astype(jnp.float32)
        h = jnp.maximum(
            jnp.matmul(xf, jnp.asarray(w1, jnp.float32),
                       precision=lax.Precision.HIGHEST) + b1, 0.0)
        return jnp.matmul(h, jnp.asarray(w2, jnp.float32),
                          precision=lax.Precision.HIGHEST) + b2

    # --- tile selection: big DMA tiles, >= 2 (even) grid steps, capped pad waste ---
    b128 = _round_up(B, 128)
    n_steps = max(2, pl.cdiv(b128, max_tile))
    if n_steps % 2:
        n_steps += 1                                         # even steps -> balanced on v7x's 2 TCs
    tb = _round_up(pl.cdiv(b128, n_steps), 128)
    if tb >= chunk:
        tb = _round_up(tb, chunk)
        ch = chunk
    else:                                                    # tiny forced batches
        ch = tb
    n_chunks = tb // ch
    grid = pl.cdiv(b128, tb)
    b_pad = grid * tb

    # Batch on the lane axis; transpose + zero-pad fuse into one XLA copy under jit.
    x_t = jnp.pad(x_flat.T, ((0, 0), (0, b_pad - B)))        # [4, b_pad]

    params = _pack_params(w1, b1, w2, b2, ch)                # [6, 24, ch], resident

    out = pl.pallas_call(
        _make_kernel(ch, n_chunks),
        out_shape=jax.ShapeDtypeStruct((1, b_pad), jnp.float32),
        grid=(grid,),
        in_specs=[
            pl.BlockSpec((6, _HIDDEN_PAD, ch), lambda i: (0, 0, 0)),   # resident params
            pl.BlockSpec((4, tb), lambda i: (0, i)),                   # x tile, batch on lanes
        ],
        out_specs=pl.BlockSpec((1, tb), lambda i: (0, i)),             # lane-dense output
        compiler_params=pltpu.CompilerParams(
            dimension_semantics=("parallel",)),                        # shard grid across TCs
    )(params, x_t)

    return jnp.reshape(out[0, :B], (B, 1))


def _reference(x, w1, b1, w2, b2):
    xf = jnp.reshape(x, (x.shape[0], -1)).astype(jnp.float32)
    h = jnp.maximum(jnp.matmul(xf, w1, precision=lax.Precision.HIGHEST) + b1, 0.0)
    return jnp.matmul(h, w2, precision=lax.Precision.HIGHEST) + b2


def _init_params(key):
    # Deterministic init mimicking nn.Linear's uniform(-1/sqrt(fan_in), 1/sqrt(fan_in)).
    k1, k2, k3, k4 = jax.random.split(key, 4)
    bound1 = 1.0 / jnp.sqrt(4.0)
    bound2 = 1.0 / jnp.sqrt(20.0)
    w1 = jax.random.uniform(k1, (4, 20), jnp.float32, -bound1, bound1)   # stored [in, out]
    b1 = jax.random.uniform(k2, (20,), jnp.float32, -bound1, bound1)
    w2 = jax.random.uniform(k3, (20, 1), jnp.float32, -bound2, bound2)   # stored [in, out]
    b2 = jax.random.uniform(k4, (1,), jnp.float32, -bound2, bound2)
    return w1, b1, w2, b2


if __name__ == "__main__":
    key = jax.random.PRNGKey(0)
    k_params, k_x1, k_x2, k_x3 = jax.random.split(key, 4)
    w1, b1, w2, b2 = _init_params(k_params)

    # 1) Small batch (2, 2, 2) -> Flatten to 4 features, forced through the Pallas kernel.
    x_small = jax.random.normal(k_x1, (2, 2, 2), dtype=jnp.float32)
    out_small = jax.block_until_ready(
        cnn_value_forward(x_small, w1, b1, w2, b2, force_pallas=True))
    ref_small = _reference(x_small, w1, b1, w2, b2)
    assert out_small.shape == (2, 1)
    assert jnp.allclose(out_small, ref_small, atol=1e-5, rtol=1e-5)

    # 2) Ragged batch (padding path, 2 grid steps), forced through the kernel.
    x_mid = jax.random.normal(k_x2, (300, 4), dtype=jnp.float32)
    out_mid = jax.block_until_ready(
        cnn_value_forward(x_mid, w1, b1, w2, b2, force_pallas=True))
    assert out_mid.shape == (300, 1)
    assert jnp.allclose(out_mid, _reference(x_mid, w1, b1, w2, b2), atol=1e-5, rtol=1e-5)

    # 3) Larger batch -> auto Pallas path: 2-step grid + multi-chunk inner loop.
    x_big = jax.random.normal(k_x3, (4096, 4), dtype=jnp.float32)
    out_big = jax.block_until_ready(cnn_value_forward(x_big, w1, b1, w2, b2))
    assert out_big.shape == (4096, 1)
    assert jnp.allclose(out_big, _reference(x_big, w1, b1, w2, b2), atol=1e-5, rtol=1e-5)

    # 4) Tiny batch via the auto path -> small-batch plain-XLA fast path.
    out_fast = jax.block_until_ready(cnn_value_forward(x_small, w1, b1, w2, b2))
    assert jnp.allclose(out_fast, ref_small, atol=1e-5, rtol=1e-5)

    print("KERNEL_OK")
</pallas_src>

<mosaic_0001>
module attributes {stable_mosaic.version = 11 : i64} {
  func.func @kernel(%arg0: i32, %arg1: memref<6x24x128xf32, #tpu.memory_space<vmem>>, %arg2: memref<4x128xf32, #tpu.memory_space<vmem>>, %arg3: memref<1x128xf32, #tpu.memory_space<vmem>>) attributes {dimension_semantics = [#tpu.dimension_semantics<parallel>], iteration_bounds = array<i64: 1>, scalar_prefetch = 0 : i64, scratch_operands = 0 : i64, tpu.core_type = #tpu.core_type<tc>, window_params = [{pipeline_mode = #tpu.pipeline_mode<synchronous>, transform_indices = @transform_0, window_bounds = array<i64: 6, 24, 128>}, {transform_indices = @transform_1, window_bounds = array<i64: 4, 128>}, {transform_indices = @transform_2, window_bounds = array<i64: 1, 128>}]} {
    %c0 = arith.constant 0 : index
    %c0_0 = arith.constant 0 : index
    %c0_1 = arith.constant 0 : index
    %0 = vector.load %arg1[%c0, %c0_0, %c0_1] : memref<6x24x128xf32, #tpu.memory_space<vmem>>, vector<1x24x128xf32>
    %1 = vector.shape_cast %0 : vector<1x24x128xf32> to vector<24x128xf32>
    %c1 = arith.constant 1 : index
    %c0_2 = arith.constant 0 : index
    %c0_3 = arith.constant 0 : index
    %2 = vector.load %arg1[%c1, %c0_2, %c0_3] : memref<6x24x128xf32, #tpu.memory_space<vmem>>, vector<1x24x128xf32>
    %3 = vector.shape_cast %2 : vector<1x24x128xf32> to vector<24x128xf32>
    %c2 = arith.constant 2 : index
    %c0_4 = arith.constant 0 : index
    %c0_5 = arith.constant 0 : index
    %4 = vector.load %arg1[%c2, %c0_4, %c0_5] : memref<6x24x128xf32, #tpu.memory_space<vmem>>, vector<1x24x128xf32>
    %5 = vector.shape_cast %4 : vector<1x24x128xf32> to vector<24x128xf32>
    %c3 = arith.constant 3 : index
    %c0_6 = arith.constant 0 : index
    %c0_7 = arith.constant 0 : index
    %6 = vector.load %arg1[%c3, %c0_6, %c0_7] : memref<6x24x128xf32, #tpu.memory_space<vmem>>, vector<1x24x128xf32>
    %7 = vector.shape_cast %6 : vector<1x24x128xf32> to vector<24x128xf32>
    %c4 = arith.constant 4 : index
    %c0_8 = arith.constant 0 : index
    %c0_9 = arith.constant 0 : index
    %8 = vector.load %arg1[%c4, %c0_8, %c0_9] : memref<6x24x128xf32, #tpu.memory_space<vmem>>, vector<1x24x128xf32>
    %9 = vector.shape_cast %8 : vector<1x24x128xf32> to vector<24x128xf32>
    %c5 = arith.constant 5 : index
    %c0_10 = arith.constant 0 : index
    %c0_11 = arith.constant 0 : index
    %10 = vector.load %arg1[%c5, %c0_10, %c0_11] : memref<6x24x128xf32, #tpu.memory_space<vmem>>, vector<1x24x128xf32>
    %11 = vector.shape_cast %10 : vector<1x24x128xf32> to vector<24x128xf32>
    %c0_12 = arith.constant 0 : index
    %c0_13 = arith.constant 0 : index
    %12 = vector.load %arg2[%c0_12, %c0_13] : memref<4x128xf32, #tpu.memory_space<vmem>>, vector<4x128xf32>
    %13 = vector.extract_strided_slice %12 {offsets = [0, 0], sizes = [1, 128], strides = [1, 1]} : vector<4x128xf32> to vector<1x128xf32>
    %14 = vector.broadcast %13 : vector<1x128xf32> to vector<24x128xf32>
    %15 = arith.mulf %1, %14 : vector<24x128xf32>
    %16 = arith.addf %9, %15 : vector<24x128xf32>
    %17 = vector.extract_strided_slice %12 {offsets = [1, 0], sizes = [1, 128], strides = [1, 1]} : vector<4x128xf32> to vector<1x128xf32>
    %18 = vector.broadcast %17 : vector<1x128xf32> to vector<24x128xf32>
    %19 = arith.mulf %3, %18 : vector<24x128xf32>
    %20 = arith.addf %16, %19 : vector<24x128xf32>
    %21 = vector.extract_strided_slice %12 {offsets = [2, 0], sizes = [1, 128], strides = [1, 1]} : vector<4x128xf32> to vector<1x128xf32>
    %22 = vector.broadcast %21 : vector<1x128xf32> to vector<24x128xf32>
    %23 = arith.mulf %5, %22 : vector<24x128xf32>
    %24 = arith.addf %20, %23 : vector<24x128xf32>
    %25 = vector.extract_strided_slice %12 {offsets = [3, 0], sizes = [1, 128], strides = [1, 1]} : vector<4x128xf32> to vector<1x128xf32>
    %26 = vector.broadcast %25 : vector<1x128xf32> to vector<24x128xf32>
    %27 = arith.mulf %7, %26 : vector<24x128xf32>
    %28 = arith.addf %24, %27 : vector<24x128xf32>
    %cst = arith.constant 0.000000e+00 : f32
    %29 = vector.broadcast %cst : f32 to vector<24x128xf32>
    %30 = arith.maximumf %28, %29 : vector<24x128xf32>
    %31 = arith.mulf %11, %30 : vector<24x128xf32>
    %cst_14 = arith.constant dense<0.000000e+00> : vector<128xf32>
    %32 = vector.multi_reduction <add>, %31, %cst_14 [0] : vector<24x128xf32> to vector<128xf32>
    %33 = vector.shape_cast %32 : vector<128xf32> to vector<1x128xf32>
    %c0_15 = arith.constant 0 : index
    %c0_16 = arith.constant 0 : index
    %34 = vector.load %arg3[%c0_15, %c0_16] : memref<1x128xf32, #tpu.memory_space<vmem>>, vector<1x128xf32>
    tpu.vector_store %arg3[%c0_15, %c0_16], %33 {strides = array<i32>} : memref<1x128xf32, #tpu.memory_space<vmem>>, vector<1x128xf32>,
    return
  }
  func.func @transform_0(%arg0: i32) -> (i32, i32, i32) {
    %c0_i32 = arith.constant 0 : i32
    %c0_i32_0 = arith.constant 0 : i32
    %c0_i32_1 = arith.constant 0 : i32
    %c0_i32_2 = arith.constant 0 : i32
    return %c0_i32, %c0_i32_0, %c0_i32_1 : i32, i32, i32
  }
  func.func @transform_1(%arg0: i32) -> (i32, i32) {
    %c0_i32 = arith.constant 0 : i32
    %c0_i32_0 = arith.constant 0 : i32
    return %c0_i32, %arg0 : i32, i32
  }
  func.func @transform_2(%arg0: i32) -> (i32, i32) {
    %c0_i32 = arith.constant 0 : i32
    %c0_i32_0 = arith.constant 0 : i32
    return %c0_i32, %arg0 : i32, i32
  }
}

</mosaic_0001>

<bundles_post_ra>
// kernel: cnn_value_forward.1
= control target key start
LH: loop header
LB: loop body
LE: loop exit
PB: predicated region body
PF: predicated region fallthrough
CT: control target
= control target key end

     0   :  { %v35_v0 = vlaneseq  ;;  %s184_s0 = inlined_call_operand.vmem [shape: f32[6,24,128], index: 0, kind: input, shape index: {}]   ;;  %s185_s1 = inlined_call_operand.vmem [shape: f32[4,128], index: 1, kind: input, shape index: {}]   ;;  %s186_s2 = inlined_call_operand.vmem [shape: f32[1,128], index: 2, kind: output, shape index: {}]  }
   0x1   :  { %v11_v5 = vld [vmem:[%s184_s0] sm:$0xff]  ;;  %v12_v7 = vld [vmem:[%s184_s0 + $0x8] sm:$0xff]  ;;  %v13_v8 = vld [vmem:[%s184_s0 + $0x10] sm:$0xff] }
   0x2   :  { %v36_v1 = vshrl.u32 %v35_v0, 7  ;;  %v94_v9 = vld [vmem:[%s184_s0 + $0x18] sm:$0xff]  ;;  %v95_v10 = vld [vmem:[%s184_s0 + $0x20] sm:$0xff]  ;;  %v96_v11 = vld [vmem:[%s184_s0 + $0x28] sm:$0xff] }
   0x3   :  { %v34_v12 = vld [vmem:[%s185_s1] sm:$0xf]  ;;  %v97_v13 = vld [vmem:[%s184_s0 + $0x30] sm:$0xff]  ;;  %v98_v14 = vld [vmem:[%s184_s0 + $0x38] sm:$0xff] }
   0x4   :  { %v37_v2 = vsub.s32 0, %v36_v1  ;;  %v47_v3 = vsub.s32 1, %v36_v1  ;;  %v57_v4 = vsub.s32 2, %v36_v1  ;;  %v67_v6 = vsub.s32 3, %v36_v1  ;;  %v99_v15 = vld [vmem:[%s184_s0 + $0x40] sm:$0xff]  ;;  %v104_v20 = vld [vmem:[%s184_s0 + $0x68] sm:$0xff] }
   0x5   :  { %v103_v19 = vld [vmem:[%s184_s0 + $0x60] sm:$0xff]  ;;  %v105_v21 = vld [vmem:[%s184_s0 + $0x70] sm:$0xff]  ;;  %v100_v23 = vld [vmem:[%s184_s0 + $0x48] sm:$0xff] }
   0x6   :  { %v38_v16 = vrot.slane %v34_v12, %v37_v2  ;;  %v48_v17 = vrot.slane %v34_v12, %v47_v3  ;;  %v58_v18 = vrot.slane %v34_v12, %v57_v4  ;;  %v68_v22 = vrot.slane %v34_v12, %v67_v6  ;;  %v101_v24 = vld [vmem:[%s184_s0 + $0x50] sm:$0xff]  ;;  %v102_v29 = vld [vmem:[%s184_s0 + $0x58] sm:$0xff]  ;;  %v107_v51 = vld [vmem:[%s184_s0 + $0x80] sm:$0xff] }
   0x7   :  { %v106_v50 = vld [vmem:[%s184_s0 + $0x78] sm:$0xff]  ;;  %v108_v52 = vld [vmem:[%s184_s0 + $0x88] sm:$0xff] }
   0x8   :  { %v39_v25 = vmul.f32 %v38_v16, %v11_v5  ;;  %v40_v26 = vmul.f32 %v38_v16, %v12_v7  ;;  %v41_v27 = vmul.f32 %v38_v16, %v13_v8  ;;  %v49_v28 = vmul.f32 %v94_v9, %v48_v17 }
   0x9   :  { %v50_v30 = vmul.f32 %v95_v10, %v48_v17  ;;  %v51_v31 = vmul.f32 %v96_v11, %v48_v17  ;;  %v59_v32 = vmul.f32 %v97_v13, %v58_v18  ;;  %v60_v33 = vmul.f32 %v98_v14, %v58_v18 }
   0xa   :  { %v42_v34 = vadd.f32 %v103_v19, %v39_v25  ;;  %v43_v35 = vadd.f32 %v104_v20, %v40_v26  ;;  %v44_v36 = vadd.f32 %v105_v21, %v41_v27  ;;  %v61_v37 = vmul.f32 %v99_v15, %v58_v18 }
   0xb   :  { %v69_v38 = vmul.f32 %v100_v23, %v68_v22  ;;  %v70_v39 = vmul.f32 %v101_v24, %v68_v22  ;;  %v71_v43 = vmul.f32 %v102_v29, %v68_v22 }
   0xc   :  { %v52_v40 = vadd.f32 %v49_v28, %v42_v34  ;;  %v53_v41 = vadd.f32 %v50_v30, %v43_v35  ;;  %v54_v42 = vadd.f32 %v51_v31, %v44_v36 }
   0xe   :  { %v62_v44 = vadd.f32 %v59_v32, %v52_v40  ;;  %v63_v45 = vadd.f32 %v60_v33, %v53_v41  ;;  %v64_v46 = vadd.f32 %v61_v37, %v54_v42 }
  0x10   :  { %v72_v47 = vadd.f32 %v69_v38, %v62_v44  ;;  %v73_v48 = vadd.f32 %v70_v39, %v63_v45  ;;  %v74_v49 = vadd.f32 %v71_v43, %v64_v46 }
  0x12   :  { %v75_v53 = vmax.f32 %v72_v47, 0.0  ;;  %v76_v54 = vmax.f32 %v73_v48, 0.0  ;;  %v77_v55 = vmax.f32 %v74_v49, 0.0 }
  0x14   :  { %v78_v56 = vmul.f32 %v106_v50, %v75_v53  ;;  %v79_v57 = vmul.f32 %v107_v51, %v76_v54  ;;  %v80_v58 = vmul.f32 %v108_v52, %v77_v55 }
  0x16   :  { %v81_v59 = vadd.f32 %v79_v57, %v78_v56 }
  0x18   :  { %v82_v60 = vadd.f32 %v81_v59, %v80_v58 }
  0x1a   :  { %v83_v61 = vrot.slane %v82_v60, 4 }
  0x1c   :  { %v84_v62 = vadd.f32 %v83_v61, %v82_v60 }
  0x1e   :  { %v85_v63 = vrot.slane %v84_v62, 2 }
  0x20   :  { %v86_v0 = vadd.f32 %v85_v63, %v84_v62 }
  0x22   :  { %v87_v1 = vrot.slane %v86_v0, 1 }
  0x24   :  { %v88_v2 = vadd.f32 %v87_v1, %v86_v0 }
  0x26   :  { %89 = vst [vmem:[%s186_s2] sm:$0x1] %v88_v2 }

</bundles_post_ra>
